<compile_context>
chip_gen: v7x
topology: tpu7x:2x2x1
jax: 0.10.0
libtpu: 0.0.40
codegen_flags: <defaults>
</compile_context>

<pallas_src>
import functools

import jax
import jax.numpy as jnp
import numpy as np
from jax import lax
from jax.experimental import pallas as pl
from jax.experimental.pallas import tpu as pltpu

BN_EPS = 1e-5  # nn.BatchNorm2d default


# ----------------------------------------------------------------------------
# Generation-aware VMEM budget.
# ----------------------------------------------------------------------------
def _vmem_capacity_bytes():
    try:
        cap = int(pltpu.get_tpu_info().vmem_capacity_bytes)
        if cap > 0:
            return cap
    except Exception:
        pass
    return 64 * 1024 * 1024  # conservative default (v7x per-TensorCore VMEM)


_VMEM_CAP = _vmem_capacity_bytes()
_TILE_BUDGET = _VMEM_CAP // 2
_COMPILER_PARAMS = pltpu.CompilerParams(
    dimension_semantics=("parallel", "parallel"),
    vmem_limit_bytes=int(min(_VMEM_CAP * 3 // 4, 112 * 1024 * 1024)),
)


def _pick_row_tile(total_rows, resident_bytes_per_row, fixed_bytes=0):
    """Largest divisor of total_rows that is 8-aligned (or the full extent) whose
    estimated double-buffered VMEM residency fits the tile budget."""
    legal = [d for d in range(1, total_rows + 1)
             if total_rows % d == 0 and (d % 8 == 0 or d == total_rows)]
    fitting = [d for d in legal
               if fixed_bytes + d * resident_bytes_per_row <= _TILE_BUDGET]
    # TODO(synk): exact-divisor tiling; very large awkward H would need a
    # cdiv/ragged split (masked stats) to stay near the VMEM sweet spot.
    return max(fitting) if fitting else min(legal)


def _pick_w_tile(W1, Cm, C2, H1, H2, K):
    """W-tile for the (k,1) conv kernel.  A tile's flattened lane widths are TW*Cm
    (in) and TW*C2 (out); blocks must either span the full width or keep both lane
    widths 128-aligned.  Prefer the smallest lane-dense tile that fits (the per-tap
    mixing matrix grows as TW^2), else the largest fitting one, else full width."""
    cands = [d for d in range(1, W1 + 1) if W1 % d == 0 and
             (d == W1 or ((d * Cm) % 128 == 0 and (d * C2) % 128 == 0))]

    def resident_bytes(tw):
        in_tile = H1 * tw * Cm * 4
        out_tile = H2 * tw * C2 * 4
        m2 = K * (tw * Cm) * (tw * C2) * 4
        return 2 * (in_tile + out_tile) + 2 * m2 + 3 * max(in_tile, out_tile)

    fitting = [d for d in cands if resident_bytes(d) <= _TILE_BUDGET]
    if fitting:
        dense = [d for d in fitting if d * Cm >= 128 and d * C2 >= 128]
        return min(dense) if dense else max(fitting)
    # TODO(synk): nothing fits the budget; fall back to the least-bad legal tile.
    return min(cands, key=resident_bytes)


# ----------------------------------------------------------------------------
# Kernel A: cv1 = (1,k) conv, stride (1,s), pad (0,k//2), no bias.
# One banded matmul per row tile; per-block BN partial sums as extra output.
# ----------------------------------------------------------------------------
def _conv_1xk_banded(x_flat, m1, *, mxu_dtype=jnp.float32):
    """x_flat: (N, H, W*Cin) f32.  m1: (W*Cin, W1*Cm) banded weight (taps, halo and
    W-stride folded in).  Returns y1_flat (N, H, W1*Cm) f32 and partial BN stats
    (N*nT, 2, W1*Cm) f32 (per-block column sums / sums of squares)."""
    N, H, WCin = x_flat.shape
    WoCm = int(m1.shape[1])
    m1_bytes = int(np.prod(m1.shape)) * m1.dtype.itemsize
    # Residency per tile row: double-buffered in+out block rows + ~2 temporaries.
    row_bytes = 4 * (2 * WCin + 4 * WoCm)
    TH = _pick_row_tile(H, row_bytes, fixed_bytes=2 * m1_bytes)
    nT = H // TH

    def kernel(x_ref, m_ref, y_ref, st_ref):
        acc = jnp.dot(x_ref[...].astype(mxu_dtype), m_ref[...],
                      preferred_element_type=jnp.float32)        # (TH, W1*Cm)
        y_ref[...] = acc
        st_ref[...] = jnp.concatenate(
            [jnp.sum(acc, axis=0, keepdims=True),
             jnp.sum(acc * acc, axis=0, keepdims=True)], axis=0)

    return pl.pallas_call(
        kernel,
        out_shape=(jax.ShapeDtypeStruct((N, H, WoCm), jnp.float32),
                   jax.ShapeDtypeStruct((N * nT, 2, WoCm), jnp.float32)),
        grid=(N, nT),
        in_specs=[
            pl.BlockSpec((None, TH, WCin), lambda n, t: (n, t, 0)),
            pl.BlockSpec((WCin, WoCm), lambda n, t: (0, 0)),
        ],
        out_specs=[
            pl.BlockSpec((None, TH, WoCm), lambda n, t: (n, t, 0)),
            pl.BlockSpec((None, 2, WoCm), lambda n, t: (n * nT + t, 0, 0)),
        ],
        compiler_params=_COMPILER_PARAMS,
    )(x_flat, m1)


# ----------------------------------------------------------------------------
# Kernel B: BN1-apply + SiLU fused into cv2 = (k,1) grouped conv, stride (s,1),
# pad (k//2,0), no bias.  Per-block BN2 partial sums as extra output.
# ----------------------------------------------------------------------------
def _bnsilu_conv_kx1_banded(y1_flat, scale1, shift1, w2full, *, stride,
                            mxu_dtype=jnp.float32):
    """y1_flat: (N, H1, W1*Cm) f32 (pre-BN cv1 output).  scale1/shift1: (Cm,) folded
    BN1 affine.  w2full: (K, Cm, C2) grouped weight expanded to dense (zeros across
    groups, so there is no in-kernel group concatenation).  Returns y2_flat
    (N, H2, W1*C2) f32 and partial BN2 stats (N*nT, 2, TW*C2) f32."""
    N, H1, WCm = y1_flat.shape
    K, Cm, C2 = int(w2full.shape[0]), int(w2full.shape[1]), int(w2full.shape[2])
    W1 = WCm // Cm
    p = K // 2
    H2 = (H1 + 2 * p - K) // stride + 1

    TW = _pick_w_tile(W1, Cm, C2, H1, H2, K)
    nT = W1 // TW
    TWCm, TWC2 = TW * Cm, TW * C2

    # Per-tap block-diagonal channel-mixing matrices: M2[dy] = kron(I_TW, w2full[dy]).
    eye = jnp.eye(TW, dtype=jnp.float32)
    m2 = jnp.einsum("ab,kmn->kambn", eye, w2full.astype(jnp.float32))
    m2 = m2.reshape(K, TWCm, TWC2).astype(mxu_dtype)

    # BN1 affine tiled over the TW width positions of one tile (lane layout is
    # W-major / C-minor; the affine is per-channel so every tile reuses this row).
    ss1 = jnp.stack([jnp.tile(scale1, TW), jnp.tile(shift1, TW)], axis=0)
    ss1 = ss1.astype(jnp.float32)

    # Static per-tap valid output-row ranges (H halo handled here: no padded copy of
    # the tile, only tiny zero row-slabs for the edge taps).
    taps = []
    for dy in range(K):
        lo = max(0, -((dy - p) // stride))                    # ceil((p-dy)/stride)
        hi = min(H2 - 1, (H1 - 1 + p - dy) // stride)
        if lo > hi:
            continue
        L = hi - lo + 1
        start = stride * lo + dy - p
        taps.append((dy, lo, L, start))

    def kernel(y_ref, ss_ref, m_ref, o_ref, st_ref):
        ssv = ss_ref[...]
        a = y_ref[...] * ssv[0:1, :] + ssv[1:2, :]            # BN1 apply (f32)
        a = a * (1.0 / (1.0 + jnp.exp(-a)))                   # SiLU
        a = a.astype(mxu_dtype)
        acc = None
        for dy, lo, L, start in taps:
            rows = a[start:start + stride * (L - 1) + 1:stride]   # (L, TW*Cm)
            r = jnp.dot(rows, m_ref[dy], preferred_element_type=jnp.float32)
            parts = []
            if lo > 0:
                parts.append(jnp.zeros((lo, TWC2), jnp.float32))
            parts.append(r)
            if lo + L < H2:
                parts.append(jnp.zeros((H2 - lo - L, TWC2), jnp.float32))
            r = jnp.concatenate(parts, axis=0) if len(parts) > 1 else r
            acc = r if acc is None else acc + r
        o_ref[...] = acc
        st_ref[...] = jnp.concatenate(
            [jnp.sum(acc, axis=0, keepdims=True),
             jnp.sum(acc * acc, axis=0, keepdims=True)], axis=0)

    return pl.pallas_call(
        kernel,
        out_shape=(jax.ShapeDtypeStruct((N, H2, W1 * C2), jnp.float32),
                   jax.ShapeDtypeStruct((N * nT, 2, TWC2), jnp.float32)),
        grid=(N, nT),
        in_specs=[
            pl.BlockSpec((None, H1, TWCm), lambda n, t: (n, 0, t)),
            pl.BlockSpec((2, TWCm), lambda n, t: (0, 0)),
            pl.BlockSpec((K, TWCm, TWC2), lambda n, t: (0, 0, 0)),
        ],
        out_specs=[
            pl.BlockSpec((None, H2, TWC2), lambda n, t: (n, 0, t)),
            pl.BlockSpec((None, 2, TWC2), lambda n, t: (n * nT + t, 0, 0)),
        ],
        compiler_params=_COMPILER_PARAMS,
    )(y1_flat, ss1, m2)


# ----------------------------------------------------------------------------
# Kernel C: final BN2 apply + SiLU (+ optional residual), element-wise,
# on lane-dense flattened rows.
# ----------------------------------------------------------------------------
def _bn_silu_apply(y_flat, scale, shift, residual_flat=None):
    N, H, WC = y_flat.shape
    C = int(scale.shape[0])
    W = WC // C
    ss = jnp.stack([jnp.tile(scale, W), jnp.tile(shift, W)], axis=0).astype(jnp.float32)

    n_streams = 3 if residual_flat is not None else 2
    TH = _pick_row_tile(H, 4 * WC * (2 * n_streams + 1))
    nT = H // TH

    blk = pl.BlockSpec((None, TH, WC), lambda n, t: (n, t, 0))
    ss_spec = pl.BlockSpec((2, WC), lambda n, t: (0, 0))
    out_shape = jax.ShapeDtypeStruct((N, H, WC), jnp.float32)

    if residual_flat is None:
        def kernel(y_ref, s_ref, o_ref):
            ssv = s_ref[...]
            a = y_ref[...] * ssv[0:1, :] + ssv[1:2, :]
            o_ref[...] = a * (1.0 / (1.0 + jnp.exp(-a)))

        return pl.pallas_call(kernel, out_shape=out_shape, grid=(N, nT),
                              in_specs=[blk, ss_spec], out_specs=blk,
                              compiler_params=_COMPILER_PARAMS)(y_flat, ss)

    def kernel_res(y_ref, s_ref, r_ref, o_ref):
        ssv = s_ref[...]
        a = y_ref[...] * ssv[0:1, :] + ssv[1:2, :]
        o_ref[...] = r_ref[...] + a * (1.0 / (1.0 + jnp.exp(-a)))

    return pl.pallas_call(kernel_res, out_shape=out_shape, grid=(N, nT),
                          in_specs=[blk, ss_spec, blk], out_specs=blk,
                          compiler_params=_COMPILER_PARAMS)(y_flat, ss, residual_flat)


# ----------------------------------------------------------------------------
# BN partial-sum fold (tiny; plain XLA).  Training-mode (batch) statistics.
# ----------------------------------------------------------------------------
def _fold_bn(partials, count, gamma, beta, C, eps=BN_EPS):
    s = partials.sum(axis=0)                      # (2, width*C)
    s = s.reshape(2, -1, C).sum(axis=1)           # (2, C)
    mean = s[0] / count
    var = jnp.maximum(s[1] / count - mean * mean, 0.0)   # clamp E[x^2]-m^2 cancellation
    scale = gamma * lax.rsqrt(var + eps)
    shift = beta - mean * scale
    return scale, shift


# ----------------------------------------------------------------------------
# Parameters (deterministic random conv weights; BN gamma=1, beta=0 as PyTorch).
# ----------------------------------------------------------------------------
def init_cross_conv_params(key, c1, c2, *, k=3, g=1, e=1.0):
    c_ = int(c2 * e)
    assert c_ % g == 0 and c2 % g == 0
    k1, k2 = jax.random.split(key)
    w1 = jax.random.normal(k1, (k, c1, c_), jnp.float32) * np.sqrt(2.0 / (c1 * k))
    w2 = jax.random.normal(k2, (k, g, c_ // g, c2 // g), jnp.float32) * \
        np.sqrt(2.0 / ((c_ // g) * k))
    return {
        "w1": w1, "gamma1": jnp.ones((c_,), jnp.float32),
        "beta1": jnp.zeros((c_,), jnp.float32),
        "w2": w2, "gamma2": jnp.ones((c2,), jnp.float32),
        "beta2": jnp.zeros((c2,), jnp.float32),
    }


# ----------------------------------------------------------------------------
# CrossConv.forward
# ----------------------------------------------------------------------------
def cross_conv_nhwc(params, x_nhwc, *, s=1, shortcut=False, mxu_dtype=jnp.float32):
    """CrossConv forward on NHWC input; returns NHWC output.  Prefer this entry
    point inside an NHWC model — the NCHW wrapper below adds two full-activation
    layout passes that the kernels themselves do not need."""
    N, H, W, Cin = x_nhwc.shape
    w1 = params["w1"]                       # (K, Cin, Cm)
    w2 = params["w2"]                       # (K, G, Cm//G, C2//G)
    K, _, Cm = w1.shape
    G, cing, coutg = int(w2.shape[1]), int(w2.shape[2]), int(w2.shape[3])
    C2 = G * coutg
    p = K // 2
    H1 = H
    W1 = (W + 2 * p - K) // s + 1
    H2 = (H1 + 2 * p - K) // s + 1

    add = shortcut and (Cin == C2)
    if add and (H2 != H or W1 != W):
        raise ValueError("shortcut add requires stride 1 (matching spatial dims).")

    x_flat = x_nhwc.astype(jnp.float32).reshape(N, H, W * Cin)  # lane-dense rows (free reshape)

    # cv1: fold the k taps, the W halo and the W stride into one banded weight matrix
    #   M1[w*Cin+ci, wo*Cm+co] = w1[w - s*wo + p, ci, co]   (0 outside the band)
    # so Kernel A is a single lane-dense matmul with no in-kernel pad/slice/reshape.
    ind = np.zeros((K, W, W1), np.float32)
    for dx in range(K):
        for wo in range(W1):
            w_in = s * wo + dx - p
            if 0 <= w_in < W:
                ind[dx, w_in, wo] = 1.0
    m1 = jnp.einsum("dwv,dio->wivo", jnp.asarray(ind), w1.astype(jnp.float32))
    m1 = m1.reshape(W * Cin, W1 * Cm).astype(mxu_dtype)
    # TODO(synk): the banded-matmul path targets the small-channel regime (its weight
    # matrix grows as (W*Cin)x(W1*Cm)); wide-channel layers should switch to a
    # per-tap channels-on-lanes path where lane density is no longer a problem.

    y1_flat, st1 = _conv_1xk_banded(x_flat, m1, mxu_dtype=mxu_dtype)
    scale1, shift1 = _fold_bn(st1, float(N * H1 * W1),
                              params["gamma1"], params["beta1"], Cm)

    # cv2: grouped (k,1) conv; groups become zero blocks of a dense (Cm, C2) mix.
    w2full = jnp.zeros((K, Cm, C2), jnp.float32)
    for gi in range(G):
        w2full = w2full.at[:, gi * cing:(gi + 1) * cing,
                           gi * coutg:(gi + 1) * coutg].set(w2[:, gi].astype(jnp.float32))

    y2_flat, st2 = _bnsilu_conv_kx1_banded(y1_flat, scale1, shift1, w2full,
                                           stride=s, mxu_dtype=mxu_dtype)
    scale2, shift2 = _fold_bn(st2, float(N * H2 * W1),
                              params["gamma2"], params["beta2"], C2)

    out_flat = _bn_silu_apply(y2_flat, scale2, shift2,
                              residual_flat=x_flat if add else None)
    return out_flat.reshape(N, H2, W1, C2)


def cross_conv(params, x_nchw, *, s=1, shortcut=False, mxu_dtype=jnp.float32):
    """PyTorch-compatible NCHW entry point (adds one layout pass on each side)."""
    xh = jnp.transpose(x_nchw, (0, 2, 3, 1))
    out = cross_conv_nhwc(params, xh, s=s, shortcut=shortcut, mxu_dtype=mxu_dtype)
    return jnp.transpose(out, (0, 3, 1, 2))


cross_conv_forward = jax.jit(functools.partial(cross_conv, s=1, shortcut=False))


if __name__ == "__main__":
    key = jax.random.PRNGKey(0)
    kp, kx = jax.random.split(key)

    c1, c2, k, s, g, e = 4, 4, 3, 1, 1, 1.0
    params = init_cross_conv_params(kp, c1, c2, k=k, g=g, e=e)

    x = jax.random.normal(kx, (2, c1, 16, 16), jnp.float32)

    out = jax.block_until_ready(cross_conv_forward(params, x))

    out_np = np.asarray(out)
    assert out_np.shape == (2, c2, 16, 16)
    assert np.all(np.isfinite(out_np))
    print("KERNEL_OK")
</pallas_src>

<mosaic_0001>
module attributes {stable_mosaic.version = 11 : i64} {
  func.func @kernel(%arg0: i32, %arg1: i32, %arg2: memref<1x16x64xf32, #tpu.memory_space<vmem>>, %arg3: memref<64x64xf32, #tpu.memory_space<vmem>>, %arg4: memref<1x16x64xf32, #tpu.memory_space<vmem>>, %arg5: memref<1x2x64xf32, #tpu.memory_space<vmem>>) attributes {dimension_semantics = [#tpu.dimension_semantics<parallel>, #tpu.dimension_semantics<parallel>], iteration_bounds = array<i64: 2, 1>, scalar_prefetch = 0 : i64, scratch_operands = 0 : i64, tpu.core_type = #tpu.core_type<tc>, window_params = [{transform_indices = @transform_0, window_bounds = array<i64: 1, 16, 64>}, {pipeline_mode = #tpu.pipeline_mode<synchronous>, transform_indices = @transform_1, window_bounds = array<i64: 64, 64>}, {transform_indices = @transform_2, window_bounds = array<i64: 1, 16, 64>}, {transform_indices = @transform_3, window_bounds = array<i64: 1, 2, 64>}]} {
    %c0 = arith.constant 0 : index
    %c0_0 = arith.constant 0 : index
    %c0_1 = arith.constant 0 : index
    %0 = vector.load %arg2[%c0, %c0_0, %c0_1] : memref<1x16x64xf32, #tpu.memory_space<vmem>>, vector<1x16x64xf32>
    %1 = vector.shape_cast %0 : vector<1x16x64xf32> to vector<16x64xf32>
    %c0_2 = arith.constant 0 : index
    %c0_3 = arith.constant 0 : index
    %2 = vector.load %arg3[%c0_2, %c0_3] : memref<64x64xf32, #tpu.memory_space<vmem>>, vector<64x64xf32>
    %cst = arith.constant dense<0.000000e+00> : vector<16x64xf32>
    %3 = tpu.matmul %1, %2, %cst {dimension_numbers = #tpu.dot_dimension_numbers<[1], [0], [0], [1], [0, 0, 1, 1], [], []>} : vector<16x64xf32>, vector<64x64xf32>, vector<16x64xf32> -> vector<16x64xf32>
    %c0_4 = arith.constant 0 : index
    %c0_5 = arith.constant 0 : index
    %c0_6 = arith.constant 0 : index
    %4 = vector.load %arg4[%c0_4, %c0_5, %c0_6] : memref<1x16x64xf32, #tpu.memory_space<vmem>>, vector<1x16x64xf32>
    %5 = vector.shape_cast %4 : vector<1x16x64xf32> to vector<16x64xf32>
    %6 = vector.shape_cast %3 : vector<16x64xf32> to vector<1x16x64xf32>
    tpu.vector_store %arg4[%c0_4, %c0_5, %c0_6], %6 {strides = array<i32>} : memref<1x16x64xf32, #tpu.memory_space<vmem>>, vector<1x16x64xf32>,
    %cst_7 = arith.constant dense<0.000000e+00> : vector<64xf32>
    %7 = vector.multi_reduction <add>, %3, %cst_7 [0] : vector<16x64xf32> to vector<64xf32>
    %8 = vector.shape_cast %7 : vector<64xf32> to vector<1x64xf32>
    %9 = arith.mulf %3, %3 : vector<16x64xf32>
    %cst_8 = arith.constant dense<0.000000e+00> : vector<64xf32>
    %10 = vector.multi_reduction <add>, %9, %cst_8 [0] : vector<16x64xf32> to vector<64xf32>
    %11 = vector.shape_cast %10 : vector<64xf32> to vector<1x64xf32>
    %12 = tpu.concatenate %8, %11 in 0 : vector<1x64xf32>, vector<1x64xf32> -> vector<2x64xf32>
    %c0_9 = arith.constant 0 : index
    %c0_10 = arith.constant 0 : index
    %c0_11 = arith.constant 0 : index
    %13 = vector.load %arg5[%c0_9, %c0_10, %c0_11] : memref<1x2x64xf32, #tpu.memory_space<vmem>>, vector<1x2x64xf32>
    %14 = vector.shape_cast %13 : vector<1x2x64xf32> to vector<2x64xf32>
    %15 = vector.shape_cast %12 : vector<2x64xf32> to vector<1x2x64xf32>
    tpu.vector_store %arg5[%c0_9, %c0_10, %c0_11], %15 {strides = array<i32>} : memref<1x2x64xf32, #tpu.memory_space<vmem>>, vector<1x2x64xf32>,
    return
  }
  func.func @transform_0(%arg0: i32, %arg1: i32) -> (i32, i32, i32) {
    %c0_i32 = arith.constant 0 : i32
    %c0_i32_0 = arith.constant 0 : i32
    return %arg0, %arg1, %c0_i32 : i32, i32, i32
  }
  func.func @transform_1(%arg0: i32, %arg1: i32) -> (i32, i32) {
    %c0_i32 = arith.constant 0 : i32
    %c0_i32_0 = arith.constant 0 : i32
    %c0_i32_1 = arith.constant 0 : i32
    return %c0_i32, %c0_i32_0 : i32, i32
  }
  func.func @transform_2(%arg0: i32, %arg1: i32) -> (i32, i32, i32) {
    %c0_i32 = arith.constant 0 : i32
    %c0_i32_0 = arith.constant 0 : i32
    return %arg0, %arg1, %c0_i32 : i32, i32, i32
  }
  func.func @transform_3(%arg0: i32, %arg1: i32) -> (i32, i32, i32) {
    %c1_i32 = arith.constant 1 : i32
    %0 = arith.muli %arg0, %c1_i32 : i32
    %1 = arith.addi %0, %arg1 : i32
    %c0_i32 = arith.constant 0 : i32
    %c0_i32_0 = arith.constant 0 : i32
    %c0_i32_1 = arith.constant 0 : i32
    return %1, %c0_i32, %c0_i32_0 : i32, i32, i32
  }
}

module attributes {stable_mosaic.version = 11 : i64} {
  func.func @kernel(%arg0: i32, %arg1: i32, %arg2: memref<1x16x64xf32, #tpu.memory_space<vmem>>, %arg3: memref<2x64xf32, #tpu.memory_space<vmem>>, %arg4: memref<3x64x64xf32, #tpu.memory_space<vmem>>, %arg5: memref<1x16x64xf32, #tpu.memory_space<vmem>>, %arg6: memref<1x2x64xf32, #tpu.memory_space<vmem>>) attributes {dimension_semantics = [#tpu.dimension_semantics<parallel>, #tpu.dimension_semantics<parallel>], iteration_bounds = array<i64: 2, 1>, scalar_prefetch = 0 : i64, scratch_operands = 0 : i64, tpu.core_type = #tpu.core_type<tc>, window_params = [{transform_indices = @transform_0, window_bounds = array<i64: 1, 16, 64>}, {pipeline_mode = #tpu.pipeline_mode<synchronous>, transform_indices = @transform_1, window_bounds = array<i64: 2, 64>}, {pipeline_mode = #tpu.pipeline_mode<synchronous>, transform_indices = @transform_2, window_bounds = array<i64: 3, 64, 64>}, {transform_indices = @transform_3, window_bounds = array<i64: 1, 16, 64>}, {transform_indices = @transform_4, window_bounds = array<i64: 1, 2, 64>}]} {
    %c0 = arith.constant 0 : index
    %c0_0 = arith.constant 0 : index
    %0 = vector.load %arg3[%c0, %c0_0] : memref<2x64xf32, #tpu.memory_space<vmem>>, vector<2x64xf32>
    %c0_1 = arith.constant 0 : index
    %c0_2 = arith.constant 0 : index
    %c0_3 = arith.constant 0 : index
    %1 = vector.load %arg2[%c0_1, %c0_2, %c0_3] : memref<1x16x64xf32, #tpu.memory_space<vmem>>, vector<1x16x64xf32>
    %2 = vector.shape_cast %1 : vector<1x16x64xf32> to vector<16x64xf32>
    %3 = vector.extract_strided_slice %0 {offsets = [0, 0], sizes = [1, 64], strides = [1, 1]} : vector<2x64xf32> to vector<1x64xf32>
    %4 = vector.broadcast %3 : vector<1x64xf32> to vector<16x64xf32>
    %5 = arith.mulf %2, %4 : vector<16x64xf32>
    %6 = vector.extract_strided_slice %0 {offsets = [1, 0], sizes = [1, 64], strides = [1, 1]} : vector<2x64xf32> to vector<1x64xf32>
    %7 = vector.broadcast %6 : vector<1x64xf32> to vector<16x64xf32>
    %8 = arith.addf %5, %7 : vector<16x64xf32>
    %cst = arith.constant 0.000000e+00 : f32
    %9 = vector.broadcast %cst : f32 to vector<16x64xf32>
    %10 = arith.subf %9, %8 : vector<16x64xf32>
    %11 = math.exp %10 : vector<16x64xf32>
    %cst_4 = arith.constant 1.000000e+00 : f32
    %12 = vector.broadcast %cst_4 : f32 to vector<16x64xf32>
    %13 = arith.addf %12, %11 : vector<16x64xf32>
    %cst_5 = arith.constant 1.000000e+00 : f32
    %14 = vector.broadcast %cst_5 : f32 to vector<16x64xf32>
    %15 = arith.divf %14, %13 : vector<16x64xf32>
    %16 = arith.mulf %8, %15 : vector<16x64xf32>
    %17 = vector.extract_strided_slice %16 {offsets = [0, 0], sizes = [15, 64], strides = [1, 1]} : vector<16x64xf32> to vector<15x64xf32>
    %c0_6 = arith.constant 0 : index
    %c0_7 = arith.constant 0 : index
    %c0_8 = arith.constant 0 : index
    %18 = vector.load %arg4[%c0_6, %c0_7, %c0_8] : memref<3x64x64xf32, #tpu.memory_space<vmem>>, vector<1x64x64xf32>
    %19 = vector.shape_cast %18 : vector<1x64x64xf32> to vector<64x64xf32>
    %cst_9 = arith.constant dense<0.000000e+00> : vector<15x64xf32>
    %20 = tpu.matmul %17, %19, %cst_9 {dimension_numbers = #tpu.dot_dimension_numbers<[1], [0], [0], [1], [0, 0, 1, 1], [], []>} : vector<15x64xf32>, vector<64x64xf32>, vector<15x64xf32> -> vector<15x64xf32>
    %cst_10 = arith.constant 0.000000e+00 : f32
    %21 = vector.broadcast %cst_10 : f32 to vector<1x64xf32>
    %22 = tpu.concatenate %21, %20 in 0 : vector<1x64xf32>, vector<15x64xf32> -> vector<16x64xf32>
    %c1 = arith.constant 1 : index
    %c0_11 = arith.constant 0 : index
    %c0_12 = arith.constant 0 : index
    %23 = vector.load %arg4[%c1, %c0_11, %c0_12] : memref<3x64x64xf32, #tpu.memory_space<vmem>>, vector<1x64x64xf32>
    %24 = vector.shape_cast %23 : vector<1x64x64xf32> to vector<64x64xf32>
    %cst_13 = arith.constant dense<0.000000e+00> : vector<16x64xf32>
    %25 = tpu.matmul %16, %24, %cst_13 {dimension_numbers = #tpu.dot_dimension_numbers<[1], [0], [0], [1], [0, 0, 1, 1], [], []>} : vector<16x64xf32>, vector<64x64xf32>, vector<16x64xf32> -> vector<16x64xf32>
    %26 = arith.addf %22, %25 : vector<16x64xf32>
    %27 = vector.extract_strided_slice %16 {offsets = [1, 0], sizes = [15, 64], strides = [1, 1]} : vector<16x64xf32> to vector<15x64xf32>
    %c2 = arith.constant 2 : index
    %c0_14 = arith.constant 0 : index
    %c0_15 = arith.constant 0 : index
    %28 = vector.load %arg4[%c2, %c0_14, %c0_15] : memref<3x64x64xf32, #tpu.memory_space<vmem>>, vector<1x64x64xf32>
    %29 = vector.shape_cast %28 : vector<1x64x64xf32> to vector<64x64xf32>
    %cst_16 = arith.constant dense<0.000000e+00> : vector<15x64xf32>
    %30 = tpu.matmul %27, %29, %cst_16 {dimension_numbers = #tpu.dot_dimension_numbers<[1], [0], [0], [1], [0, 0, 1, 1], [], []>} : vector<15x64xf32>, vector<64x64xf32>, vector<15x64xf32> -> vector<15x64xf32>
    %cst_17 = arith.constant 0.000000e+00 : f32
    %31 = vector.broadcast %cst_17 : f32 to vector<1x64xf32>
    %32 = tpu.concatenate %30, %31 in 0 : vector<15x64xf32>, vector<1x64xf32> -> vector<16x64xf32>
    %33 = arith.addf %26, %32 : vector<16x64xf32>
    %c0_18 = arith.constant 0 : index
    %c0_19 = arith.constant 0 : index
    %c0_20 = arith.constant 0 : index
    %34 = vector.load %arg5[%c0_18, %c0_19, %c0_20] : memref<1x16x64xf32, #tpu.memory_space<vmem>>, vector<1x16x64xf32>
    %35 = vector.shape_cast %34 : vector<1x16x64xf32> to vector<16x64xf32>
    %36 = vector.shape_cast %33 : vector<16x64xf32> to vector<1x16x64xf32>
    tpu.vector_store %arg5[%c0_18, %c0_19, %c0_20], %36 {strides = array<i32>} : memref<1x16x64xf32, #tpu.memory_space<vmem>>, vector<1x16x64xf32>,
    %cst_21 = arith.constant dense<0.000000e+00> : vector<64xf32>
    %37 = vector.multi_reduction <add>, %33, %cst_21 [0] : vector<16x64xf32> to vector<64xf32>
    %38 = vector.shape_cast %37 : vector<64xf32> to vector<1x64xf32>
    %39 = arith.mulf %33, %33 : vector<16x64xf32>
    %cst_22 = arith.constant dense<0.000000e+00> : vector<64xf32>
    %40 = vector.multi_reduction <add>, %39, %cst_22 [0] : vector<16x64xf32> to vector<64xf32>
    %41 = vector.shape_cast %40 : vector<64xf32> to vector<1x64xf32>
    %42 = tpu.concatenate %38, %41 in 0 : vector<1x64xf32>, vector<1x64xf32> -> vector<2x64xf32>
    %c0_23 = arith.constant 0 : index
    %c0_24 = arith.constant 0 : index
    %c0_25 = arith.constant 0 : index
    %43 = vector.load %arg6[%c0_23, %c0_24, %c0_25] : memref<1x2x64xf32, #tpu.memory_space<vmem>>, vector<1x2x64xf32>
    %44 = vector.shape_cast %43 : vector<1x2x64xf32> to vector<2x64xf32>
    %45 = vector.shape_cast %42 : vector<2x64xf32> to vector<1x2x64xf32>
    tpu.vector_store %arg6[%c0_23, %c0_24, %c0_25], %45 {strides = array<i32>} : memref<1x2x64xf32, #tpu.memory_space<vmem>>, vector<1x2x64xf32>,
    return
  }
  func.func @transform_0(%arg0: i32, %arg1: i32) -> (i32, i32, i32) {
    %c0_i32 = arith.constant 0 : i32
    %c0_i32_0 = arith.constant 0 : i32
    return %arg0, %c0_i32, %arg1 : i32, i32, i32
  }
  func.func @transform_1(%arg0: i32, %arg1: i32) -> (i32, i32) {
    %c0_i32 = arith.constant 0 : i32
    %c0_i32_0 = arith.constant 0 : i32
    %c0_i32_1 = arith.constant 0 : i32
    return %c0_i32, %c0_i32_0 : i32, i32
  }
  func.func @transform_2(%arg0: i32, %arg1: i32) -> (i32, i32, i32) {
    %c0_i32 = arith.constant 0 : i32
    %c0_i32_0 = arith.constant 0 : i32
    %c0_i32_1 = arith.constant 0 : i32
    %c0_i32_2 = arith.constant 0 : i32
    return %c0_i32, %c0_i32_0, %c0_i32_1 : i32, i32, i32
  }
  func.func @transform_3(%arg0: i32, %arg1: i32) -> (i32, i32, i32) {
    %c0_i32 = arith.constant 0 : i32
    %c0_i32_0 = arith.constant 0 : i32
    return %arg0, %c0_i32, %arg1 : i32, i32, i32
  }
  func.func @transform_4(%arg0: i32, %arg1: i32) -> (i32, i32, i32) {
    %c1_i32 = arith.constant 1 : i32
    %0 = arith.muli %arg0, %c1_i32 : i32
    %1 = arith.addi %0, %arg1 : i32
    %c0_i32 = arith.constant 0 : i32
    %c0_i32_0 = arith.constant 0 : i32
    %c0_i32_1 = arith.constant 0 : i32
    return %1, %c0_i32, %c0_i32_0 : i32, i32, i32
  }
}

module attributes {stable_mosaic.version = 11 : i64} {
  func.func @kernel(%arg0: i32, %arg1: i32, %arg2: memref<1x16x64xf32, #tpu.memory_space<vmem>>, %arg3: memref<2x64xf32, #tpu.memory_space<vmem>>, %arg4: memref<1x16x64xf32, #tpu.memory_space<vmem>>) attributes {dimension_semantics = [#tpu.dimension_semantics<parallel>, #tpu.dimension_semantics<parallel>], iteration_bounds = array<i64: 2, 1>, scalar_prefetch = 0 : i64, scratch_operands = 0 : i64, tpu.core_type = #tpu.core_type<tc>, window_params = [{transform_indices = @transform_0, window_bounds = array<i64: 1, 16, 64>}, {pipeline_mode = #tpu.pipeline_mode<synchronous>, transform_indices = @transform_1, window_bounds = array<i64: 2, 64>}, {transform_indices = @transform_2, window_bounds = array<i64: 1, 16, 64>}]} {
    %c0 = arith.constant 0 : index
    %c0_0 = arith.constant 0 : index
    %0 = vector.load %arg3[%c0, %c0_0] : memref<2x64xf32, #tpu.memory_space<vmem>>, vector<2x64xf32>
    %c0_1 = arith.constant 0 : index
    %c0_2 = arith.constant 0 : index
    %c0_3 = arith.constant 0 : index
    %1 = vector.load %arg2[%c0_1, %c0_2, %c0_3] : memref<1x16x64xf32, #tpu.memory_space<vmem>>, vector<1x16x64xf32>
    %2 = vector.shape_cast %1 : vector<1x16x64xf32> to vector<16x64xf32>
    %3 = vector.extract_strided_slice %0 {offsets = [0, 0], sizes = [1, 64], strides = [1, 1]} : vector<2x64xf32> to vector<1x64xf32>
    %4 = vector.broadcast %3 : vector<1x64xf32> to vector<16x64xf32>
    %5 = arith.mulf %2, %4 : vector<16x64xf32>
    %6 = vector.extract_strided_slice %0 {offsets = [1, 0], sizes = [1, 64], strides = [1, 1]} : vector<2x64xf32> to vector<1x64xf32>
    %7 = vector.broadcast %6 : vector<1x64xf32> to vector<16x64xf32>
    %8 = arith.addf %5, %7 : vector<16x64xf32>
    %cst = arith.constant 0.000000e+00 : f32
    %9 = vector.broadcast %cst : f32 to vector<16x64xf32>
    %10 = arith.subf %9, %8 : vector<16x64xf32>
    %11 = math.exp %10 : vector<16x64xf32>
    %cst_4 = arith.constant 1.000000e+00 : f32
    %12 = vector.broadcast %cst_4 : f32 to vector<16x64xf32>
    %13 = arith.addf %12, %11 : vector<16x64xf32>
    %cst_5 = arith.constant 1.000000e+00 : f32
    %14 = vector.broadcast %cst_5 : f32 to vector<16x64xf32>
    %15 = arith.divf %14, %13 : vector<16x64xf32>
    %16 = arith.mulf %8, %15 : vector<16x64xf32>
    %c0_6 = arith.constant 0 : index
    %c0_7 = arith.constant 0 : index
    %c0_8 = arith.constant 0 : index
    %17 = vector.load %arg4[%c0_6, %c0_7, %c0_8] : memref<1x16x64xf32, #tpu.memory_space<vmem>>, vector<1x16x64xf32>
    %18 = vector.shape_cast %17 : vector<1x16x64xf32> to vector<16x64xf32>
    %19 = vector.shape_cast %16 : vector<16x64xf32> to vector<1x16x64xf32>
    tpu.vector_store %arg4[%c0_6, %c0_7, %c0_8], %19 {strides = array<i32>} : memref<1x16x64xf32, #tpu.memory_space<vmem>>, vector<1x16x64xf32>,
    return
  }
  func.func @transform_0(%arg0: i32, %arg1: i32) -> (i32, i32, i32) {
    %c0_i32 = arith.constant 0 : i32
    %c0_i32_0 = arith.constant 0 : i32
    return %arg0, %arg1, %c0_i32 : i32, i32, i32
  }
  func.func @transform_1(%arg0: i32, %arg1: i32) -> (i32, i32) {
    %c0_i32 = arith.constant 0 : i32
    %c0_i32_0 = arith.constant 0 : i32
    %c0_i32_1 = arith.constant 0 : i32
    return %c0_i32, %c0_i32_0 : i32, i32
  }
  func.func @transform_2(%arg0: i32, %arg1: i32) -> (i32, i32, i32) {
    %c0_i32 = arith.constant 0 : i32
    %c0_i32_0 = arith.constant 0 : i32
    return %arg0, %arg1, %c0_i32 : i32, i32, i32
  }
}

</mosaic_0001>

<bundles_post_ra>
// kernel: tile.27
= control target key start
LH: loop header
LB: loop body
LE: loop exit
PB: predicated region body
PF: predicated region fallthrough
CT: control target
= control target key end

     0   :  { %s28_s0 = inlined_call_operand.vmem [shape: f32[4], index: 0, kind: input, shape index: {}]   ;;  %s29_s1 = inlined_call_operand.vmem [shape: f32[16,4], index: 1, kind: output, shape index: {}]  }
   0x1   :  { %v4_v0 = vld [vmem:[%s28_s0] ss:$0 sm:$0xff] }
   0x2   :  { %5 = vst [vmem:[%s29_s1] sm:$0xff] %v4_v0  ;;  %8 = vst [vmem:[%s29_s1 + $0x8] sm:$0xff] %v4_v0 }

// kernel: tile.29
= control target key start
LH: loop header
LB: loop body
LE: loop exit
PB: predicated region body
PF: predicated region fallthrough
CT: control target
= control target key end

     0   :  { %s131_s10 = smov 60   ;;  %s132_s11 = smov 52   ;;  %vm3_vm0 = vcmask 31744   ;;  %vm9_vm1 = vcmask 523744   ;;  %vm15_vm2 = vcmask 490944   ;;  %vm21_vm3 = vcmask 458144   ;;  %s207_s0 = inlined_call_operand.vmem [shape: f32[16,4], index: 0, kind: input, shape index: {}]   ;;  %s208_s1 = inlined_call_operand.vmem [shape: f32[1,64], index: 1, kind: output, shape index: {}]  }
   0x1   :  { %v101_v0 = vld [vmem:[%s207_s0 + $0xf] sm:$0x1]   ;;  %v103_v1 = vld [vmem:[%s207_s0 + $0xd] sm:$0x1]   ;;  %v102_v2 = vld [vmem:[%s207_s0 + $0xe] sm:$0x1]  }
   0x2   :  { %7 = vrot.lane.b32.xlu0 %v101_v0, %s131_s10  ;;  %19 = vrot.lane.b32.xlu1 %v103_v1, %s132_s11  ;;  %v104_v3 = vld [vmem:[%s207_s0 + $0xc] sm:$0x1]   ;;  %s133_s16 = smov 56   ;;  %s134_s17 = smov 48   ;;  %v105_v4 = vld [vmem:[%s207_s0 + $0xb] sm:$0x1]  }
   0x3   :  { %v106_v5 = vld [vmem:[%s207_s0 + $0xa] sm:$0x1]   ;;  %v2_v6 = vld [vmem:[%s207_s0] sm:$0x1]   ;;  %s135_s24 = smov 44   ;;  %s136_s25 = smov 40  }
   0x4   :  { %4 = vst.msk [vmem:[#allocation0] sm:$0x1] %vm3_vm0, %v2_v6   ;;  %v107_v7 = vld [vmem:[%s207_s0 + $0x9] sm:$0x1]   ;;  %v108_v8 = vld [vmem:[%s207_s0 + $0x8] sm:$0x1]  }
   0x5   :  { %s137_s30 = smov 36   ;;  %s138_s2 = smov 32   ;;  %v109_v9 = vld [vmem:[%s207_s0 + $0x7] sm:$0x1]   ;;  %v110_v10 = vld [vmem:[%s207_s0 + $0x6] sm:$0x1]  }
   0x6   :  { %13 = vrot.lane.b32.xlu0 %v102_v2, %s133_s16  ;;  %25 = vrot.lane.b32.xlu1 %v104_v3, %s134_s17  ;;  %s139_s7 = smov 28   ;;  %s140_s8 = smov 24   ;;  %v111_v11 = vld [vmem:[%s207_s0 + $0x5] sm:$0x1]   ;;  %v112_v12 = vld [vmem:[%s207_s0 + $0x4] sm:$0x1]  }
   0x7   :  { %s141_s13 = smov 20   ;;  %s142_s14 = smov 16   ;;  %v113_v13 = vld [vmem:[%s207_s0 + $0x3] sm:$0x1]   ;;  %v114_v14 = vld [vmem:[%s207_s0 + $0x2] sm:$0x1]  }
   0x8   :  { %s143_s19 = smov 12   ;;  %s144_s20 = smov 8   ;;  %v115_v15 = vld [vmem:[%s207_s0 + $0x1] sm:$0x1]   ;;  %vm27_vm4 = vcmask 425344   ;;  %vm33_vm5 = vcmask 392544  }
   0x9   :  { %s145_s0 = smov 4   ;;  %vm39_vm6 = vcmask 359744   ;;  %vm45_vm7 = vcmask 326944   ;;  %vm51_vm8 = vcmask 294144   ;;  %vm57_vm9 = vcmask 261344  }
   0xa   :  { %31 = vrot.lane.b32.xlu0 %v105_v4, %s135_s24  ;;  %37 = vrot.lane.b32.xlu1 %v106_v5, %s136_s25  ;;  %vm63_vm10 = vcmask 228544   ;;  %vm69_vm11 = vcmask 195744   ;;  %vm75_vm12 = vcmask 162944   ;;  %vm81_vm13 = vcmask 130144  }
   0xb   :  { %vm87_vm14 = vcmask 97344   ;;  %vm93_vm15 = vcmask 64544  }
   0xe   :  { %43 = vrot.lane.b32.xlu0 %v107_v7, %s137_s30  ;;  %49 = vrot.lane.b32.xlu1 %v108_v8, %s138_s2 }
  0x12   :  { %55 = vrot.lane.b32.xlu0 %v109_v9, %s139_s7  ;;  %61 = vrot.lane.b32.xlu1 %v110_v10, %s140_s8 }
  0x16   :  { %67 = vrot.lane.b32.xlu0 %v111_v11, %s141_s13  ;;  %73 = vrot.lane.b32.xlu1 %v112_v12, %s142_s14 }
  0x1a   :  { %79 = vrot.lane.b32.xlu0 %v113_v13, %s143_s19  ;;  %85 = vrot.lane.b32.xlu1 %v114_v14, %s144_s20 }
  0x1e   :  { %91 = vrot.lane.b32.xlu0 %v115_v15, %s145_s0 }
  0x74   :  { %v8_v16 = vpop.permute.xlu0 %7   ;;  %v20_v17 = vpop.permute.xlu1 %19  }
  0x75   :  { %10 = vst.msk [vmem:[#allocation0] sm:$0x1] %vm9_vm1, %v8_v16  }
  0x78   :  { %v14_v18 = vpop.permute.xlu0 %13   ;;  %v26_v19 = vpop.permute.xlu1 %25  }
  0x79   :  { %16 = vst.msk [vmem:[#allocation0] sm:$0x1] %vm15_vm2, %v14_v18  }
  0x7a   :  { %22 = vst.msk [vmem:[#allocation0] sm:$0x1] %vm21_vm3, %v20_v17  }
  0x7b   :  { %28 = vst.msk [vmem:[#allocation0] sm:$0x1] %vm27_vm4, %v26_v19  }
  0x7c   :  { %v32_v20 = vpop.permute.xlu0 %31   ;;  %v38_v21 = vpop.permute.xlu1 %37  }
  0x7d   :  { %34 = vst.msk [vmem:[#allocation0] sm:$0x1] %vm33_vm5, %v32_v20  }
  0x7e   :  { %40 = vst.msk [vmem:[#allocation0] sm:$0x1] %vm39_vm6, %v38_v21  }
  0x80   :  { %v44_v22 = vpop.permute.xlu0 %43   ;;  %v50_v23 = vpop.permute.xlu1 %49  }
  0x81   :  { %46 = vst.msk [vmem:[#allocation0] sm:$0x1] %vm45_vm7, %v44_v22  }
  0x82   :  { %52 = vst.msk [vmem:[#allocation0] sm:$0x1] %vm51_vm8, %v50_v23  }
  0x84   :  { %v56_v24 = vpop.permute.xlu0 %55   ;;  %v62_v25 = vpop.permute.xlu1 %61  }
  0x85   :  { %58 = vst.msk [vmem:[#allocation0] sm:$0x1] %vm57_vm9, %v56_v24  }
  0x86   :  { %64 = vst.msk [vmem:[#allocation0] sm:$0x1] %vm63_vm10, %v62_v25  }
  0x88   :  { %v68_v26 = vpop.permute.xlu0 %67   ;;  %v74_v27 = vpop.permute.xlu1 %73  }
  0x89   :  { %70 = vst.msk [vmem:[#allocation0] sm:$0x1] %vm69_vm11, %v68_v26  }
  0x8a   :  { %76 = vst.msk [vmem:[#allocation0] sm:$0x1] %vm75_vm12, %v74_v27  }
  0x8c   :  { %v80_v28 = vpop.permute.xlu0 %79   ;;  %v86_v29 = vpop.permute.xlu1 %85  }
  0x8d   :  { %82 = vst.msk [vmem:[#allocation0] sm:$0x1] %vm81_vm13, %v80_v28  }
  0x8e   :  { %88 = vst.msk [vmem:[#allocation0] sm:$0x1] %vm87_vm14, %v86_v29  }
  0x90   :  { %v92_v30 = vpop.permute.xlu0 %91  }
  0x91   :  { %94 = vst.msk [vmem:[#allocation0] sm:$0x1] %vm93_vm15, %v92_v30  }
  0x98   :  { %v98_v31 = vld [vmem:[#allocation0] sm:$0x1] }
  0x99   :  { %100 = vst [vmem:[%s208_s1] sm:$0x1] %v98_v31 }

// kernel: cross_conv.3
= control target key start
LH: loop header
LB: loop body
LE: loop exit
PB: predicated region body
PF: predicated region fallthrough
CT: control target
= control target key end

     0   :  { %s594_s12 = smov 0   ;;  %s596_s13 = smov 0   ;;  %s666_s0 = inlined_call_operand.vmem [shape: f32[2,16,64], index: 0, kind: input, shape index: {}]   ;;  %s667_s1 = inlined_call_operand.vmem [shape: f32[64,64], index: 1, kind: input, shape index: {}]   ;;  %s668_s2 = inlined_call_operand.vmem [shape: f32[2,16,64], index: 2, kind: output, shape index: {0}]   ;;  %s669_s3 = inlined_call_operand.vmem [shape: f32[2,2,64], index: 3, kind: output, shape index: {1}]  }
   0x1   :  { %s598_s14 = smov 0  }
   0x2 LB: > { %s26_s15 = sadd.s32 1, %s568_s13  ;;  %p469_p0 = scmp.ge.s32.totalorder %s572_s14, 1  ;;  %s572_s14 = sphi %s598_s14, %s14_s14   ;;  %s568_s13 = sphi %s596_s13, %s671_s13   ;;  %s564_s12 = sphi %s594_s12, %s670_s12  }
   0x3   : > { %p28_p1 = scmp.ge.s32.totalorder %s26_s15, 2  ;;  %p163_p2 = scmp.lt.s32.totalorder %s572_s14, 3 }
   0x5   : > { %s673_s15 = smov (%p28_p1, %s26_s15), 0  ;;  %p164_p3 = pnand %p469_p0, %p163_p2 }
   0x6   : > { %v228_v0 = vld [vmem:[%s667_s1] sm:$0xff] (!%p164_p3)  ;;  %v229_v1 = vld [vmem:[%s667_s1 + $0x8] sm:$0xff] (!%p164_p3)  ;;  %v230_v2 = vld [vmem:[%s667_s1 + $0x10] sm:$0xff] (!%p164_p3)  ;;  %p201_p4 = scmp.lt.s32.totalorder (!%p164_p3), %s564_s12, 1  ;;  %vm236_vm0 = vcmask (!%p164_p3), 523264   ;;  %vm340_vm1 = vcmask (!%p164_p3), 1040384  }
   0x7   : > { %167 = sbr.rel (%p164_p3) target bundleno = 257 (0x101), region = 28  ;;  %v510_v3 = vpack.c.bf16 (!%p164_p3), %v229_v1, %v228_v0  ;;  %v231_v4 = vld [vmem:[%s667_s1 + $0x18] sm:$0xff] (!%p164_p3)  ;;  %v232_v6 = vld [vmem:[%s667_s1 + $0x20] sm:$0xff] (!%p164_p3)  ;;  %v233_v7 = vld [vmem:[%s667_s1 + $0x28] sm:$0xff] (!%p164_p3)  ;;  %vm342_vm2 = vcmask (!%p164_p3), 517120  }
   0x8   : > { %v514_v5 = vpack.c.bf16 (!%p164_p3), %v231_v4, %v230_v2  ;;  %v518_v8 = vpack.c.bf16 (!%p164_p3), %v233_v7, %v232_v6  ;;  %v234_v9 = vld [vmem:[%s667_s1 + $0x30] sm:$0xff] (!%p164_p3)  ;;  %v235_v10 = vld [vmem:[%s667_s1 + $0x38] sm:$0xff] (!%p164_p3) }
   0x9   : > { %511 = vmatprep.subr.bf16.mxu0 (!%p164_p3), %v510_v3  ;;  %v522_v12 = vpack.c.bf16 (!%p164_p3), %v235_v10, %v234_v9 }
   0xa   : > { %513 = vmatpush3.bf16.msra.mxu0 (!%p164_p3), %v510_v3 }
   0xb   : > { %515 = vmatprep.subr.bf16.mxu0 (!%p164_p3), %v514_v5 }
   0xe   : > { %s675_s12 = smov (!%p201_p4, %s564_s12), 1  ;;  %517 = vmatpush3.bf16.msra.mxu0 %v514_v5 }
   0xf   : > { %s479_s28 = sshll.u32 %s675_s12, 4  ;;  %519 = vmatprep.subr.bf16.mxu0 %v518_v8  ;;  %s474_s16 = sshll.u32 %s675_s12, 1 }
  0x10   : > { %s208_s4 = scalar_lea.vmem %s666_s0, %s479_s28  ;;  %s218_s11 = scalar_lea.vmem %s668_s2, %s479_s28 }
  0x11   : > { %v226_v11 = vld [vmem:[%s208_s4] sm:$0xff]  ;;  %v227_v13 = vld [vmem:[%s208_s4 + $0x8] sm:$0xff]  ;;  %s224_s19 = scalar_lea.vmem %s669_s3, %s474_s16 }
  0x12   : > { %507 = vmatprep.mubr.msk.f32.mxu0 %vm236_vm0, %v226_v11  ;;  %521 = vmatpush3.bf16.msra.mxu0 %v518_v8 }
  0x13   : > { %523 = vmatprep.subr.bf16.mxu0 %v522_v12 }
  0x16   : > { %525 = vmatpush3.bf16.msra.mxu0 %v522_v12 }
  0x19   : > { %508 = vmatmul.mubr.msk.f32.vlgmr.msra.gmra.mrb[0].mxu0 %vm236_vm0, %v227_v13 }
  0xec   : > { %v509_v14 = vpop.f32.mrb[0].mxu0 }
  0xed   : > { %319 = vst.msk [vmem:[%s218_s11 + $0x8] sm:$0xff] %vm236_vm0, %v509_v14  ;;  %v321_v15 = vsel %vm236_vm0, %v509_v14, 0.0  ;;  %v330_v16 = vmul.f32 %v509_v14, %v509_v14  ;;  %v309_v17 = vpop.f32.mrb[1].mxu0 }
  0xee   : > { %318 = vst.msk [vmem:[%s218_s11] sm:$0xff] %vm236_vm0, %v309_v17  ;;  %v320_v18 = vsel %vm236_vm0, %v309_v17, 0.0  ;;  %v329_v19 = vmul.f32 %v309_v17, %v309_v17 }
  0xef   : > { %v332_v20 = vsel %vm236_vm0, %v330_v16, 0.0  ;;  %v322_v21 = vadd.f32 %v321_v15, %v320_v18 }
  0xf0   : > { %v331_v22 = vsel %vm236_vm0, %v329_v19, 0.0 }
  0xf1   : > { %v323_v23 = vrot.slane %v322_v21, 4  ;;  %v333_v24 = vadd.f32 %v332_v20, %v331_v22 }
  0xf3   : > { %v324_v25 = vadd.f32 %v323_v23, %v322_v21  ;;  %v334_v26 = vrot.slane %v333_v24, 4 }
  0xf5   : > { %v325_v27 = vrot.slane %v324_v25, 2  ;;  %v335_v28 = vadd.f32 %v334_v26, %v333_v24 }
  0xf7   : > { %v326_v29 = vadd.f32 %v325_v27, %v324_v25  ;;  %v336_v30 = vrot.slane %v335_v28, 2 }
  0xf9   : > { %v327_v31 = vrot.slane %v326_v29, 1  ;;  %v337_v32 = vadd.f32 %v336_v30, %v335_v28 }
  0xfb   : > { %v338_v33 = vrot.slane %v337_v32, 1  ;;  %v328_v34 = vadd.f32 %v327_v31, %v326_v29 }
  0xfd   : > { %v339_v35 = vadd.f32 %v338_v33, %v337_v32 }
  0xff   : > { %v341_v36 = vsel %vm340_vm1, %v328_v34, %v339_v35 }
 0x100   : > { %343 = vst.msk [vmem:[%s224_s19] sm:$0x3] %vm342_vm2, %v341_v36 }
 0x101 PF: > { %s14_s14 = sadd.s32 1, %s572_s14   ;;  %s670_s12 = smov %s568_s13 }
 0x102   : > { %p11_p5 = scmp.ge.s32.totalorder %s14_s14, 4   ;;  %s671_s13 = smov %s673_s15 }
 0x104   :  { %13 = sbr.rel (!%p11_p5) target bundleno = 2 (0x2), region = 70 }

// kernel: cross_conv.5
= control target key start
LH: loop header
LB: loop body
LE: loop exit
PB: predicated region body
PF: predicated region fallthrough
CT: control target
= control target key end

     0   :  { %s386_s9 = smov 0   ;;  %s388_s10 = smov 0   ;;  %s425_s0 = inlined_call_operand.vmem [shape: f32[2,16,64], index: 0, kind: input, shape index: {}]   ;;  %s426_s1 = inlined_call_operand.vmem [shape: f32[2,64], index: 1, kind: input, shape index: {}]   ;;  %s427_s2 = inlined_call_operand.vmem [shape: f32[2,16,64], index: 2, kind: output, shape index: {}]  }
   0x1   :  { %s390_s11 = smov 0  }
   0x2 LB: > { %s24_s12 = sadd.s32 1, %s365_s10  ;;  %p306_p0 = scmp.ge.s32.totalorder %s369_s11, 1  ;;  %s369_s11 = sphi %s390_s11, %s12_s11   ;;  %s365_s10 = sphi %s388_s10, %s429_s10   ;;  %s361_s9 = sphi %s386_s9, %s428_s9  }
   0x3   : > { %p26_p1 = scmp.ge.s32.totalorder %s24_s12, 2  ;;  %p133_p2 = scmp.lt.s32.totalorder %s369_s11, 3 }
   0x5   : > { %s431_s12 = smov (%p26_p1, %s24_s12), 0  ;;  %p134_p3 = pnand %p306_p0, %p133_p2 }
   0x6   : > { %p164_p4 = scmp.lt.s32.totalorder (!%p134_p3), %s361_s9, 1  ;;  %v186_v0 = vlaneseq (!%p134_p3)  ;;  %v183_v2 = vld [vmem:[%s426_s1] sm:$0x3] (!%p134_p3)  ;;  %vm212_vm0 = vcmask (!%p134_p3), 523264  }
   0x7   : > { %137 = sbr.rel (%p134_p3) target bundleno = 54 (0x36), region = 28 }
   0x8   : > { %v187_v1 = vshrl.u32 (!%p134_p3), %v186_v0, 7 }
   0xa   : > { %v188_v3 = vsub.s32 (!%p134_p3), 0, %v187_v1  ;;  %v194_v4 = vsub.s32 (!%p134_p3), 1, %v187_v1 }
   0xc   : > { %v189_v7 = vrot.slane (!%p134_p3), %v183_v2, %v188_v3  ;;  %v195_v8 = vrot.slane (!%p134_p3), %v183_v2, %v194_v4 }
   0xe   : > { %s433_s9 = smov (!%p164_p4, %s361_s9), 1 }
   0xf   : > { %s313_s15 = sshll.u32 %s433_s9, 4 }
  0x10   : > { %s171_s18 = scalar_lea.vmem %s425_s0, %s313_s15  ;;  %s181_s21 = scalar_lea.vmem %s427_s2, %s313_s15 }
  0x11   : > { %v184_v5 = vld [vmem:[%s171_s18] sm:$0xff]  ;;  %v185_v6 = vld [vmem:[%s171_s18 + $0x8] sm:$0xff] }
  0x12   : > { %v190_v9 = vmul.f32 %v189_v7, %v184_v5  ;;  %v191_v10 = vmul.f32 %v189_v7, %v185_v6 }
  0x14   : > { %v196_v11 = vadd.f32 %v195_v8, %v190_v9  ;;  %v197_v12 = vadd.f32 %v195_v8, %v191_v10 }
  0x16   : > { %v198_v13 = vsub.f32 0.0, %v196_v11  ;;  %v199_v14 = vsub.f32 0.0, %v197_v12 }
  0x18   : > { %v200_v15 = vmul.f32 1.442695, %v198_v13  ;;  %v202_v16 = vmul.f32 1.442695, %v199_v14 }
  0x1a   : > { %339 = vpow2.f32 %v200_v15 }
  0x1b   : > { %341 = vpow2.f32 %v202_v16 }
  0x24   : > { %v340_v17 = vpop.eup %339 }
  0x25   : > { %v342_v18 = vpop.eup %341  ;;  %v204_v19 = vadd.f32 1.0, %v340_v17 }
  0x26   : > { %v205_v20 = vadd.f32 1.0, %v342_v18 }
  0x27   : > { %343 = vrcp.f32 %v204_v19 }
  0x28   : > { %345 = vrcp.f32 %v205_v20 }
  0x31   : > { %v344_v21 = vpop.eup %343 }
  0x32   : > { %v346_v22 = vpop.eup %345  ;;  %v210_v23 = vmul.f32 %v344_v21, %v196_v11 }
  0x33   : > { %v211_v24 = vmul.f32 %v346_v22, %v197_v12 }
  0x34   : > { %213 = vst.msk [vmem:[%s181_s21] sm:$0xff] %vm212_vm0, %v210_v23 }
  0x35   : > { %214 = vst.msk [vmem:[%s181_s21 + $0x8] sm:$0xff] %vm212_vm0, %v211_v24 }
  0x36 PF: > { %s12_s11 = sadd.s32 1, %s369_s11   ;;  %s428_s9 = smov %s365_s10 }
  0x37   : > { %p9_p5 = scmp.ge.s32.totalorder %s12_s11, 4   ;;  %s429_s10 = smov %s431_s12 }
  0x39   :  { %11 = sbr.rel (!%p9_p5) target bundleno = 2 (0x2), region = 58 }

// kernel: cross_conv.4
= control target key start
LH: loop header
LB: loop body
LE: loop exit
PB: predicated region body
PF: predicated region fallthrough
CT: control target
= control target key end

     0   :  { %s949_s15 = smov 0   ;;  %s951_s16 = smov 0   ;;  %s1085_s0 = inlined_call_operand.vmem [shape: f32[2,16,64], index: 0, kind: input, shape index: {}]   ;;  %s1086_s1 = inlined_call_operand.vmem [shape: f32[2,64], index: 1, kind: input, shape index: {}]   ;;  %s1087_s2 = inlined_call_operand.vmem [shape: f32[3,64,64], index: 2, kind: input, shape index: {}]   ;;  %s1088_s3 = inlined_call_operand.vmem [shape: f32[2,16,64], index: 3, kind: output, shape index: {0}]   ;;  %s1089_s4 = inlined_call_operand.vmem [shape: f32[2,2,64], index: 4, kind: output, shape index: {1}]  }
   0x1   :  { %s953_s17 = smov 0  }
   0x2 LB: > { %s27_s18 = sadd.s32 1, %s918_s16  ;;  %p701_p0 = scmp.ge.s32.totalorder %s922_s17, 1  ;;  %s922_s17 = sphi %s953_s17, %s15_s17   ;;  %s918_s16 = sphi %s951_s16, %s1091_s16   ;;  %s914_s15 = sphi %s949_s15, %s1090_s15  }
   0x3   : > { %p29_p1 = scmp.ge.s32.totalorder %s27_s18, 2  ;;  %p186_p2 = scmp.lt.s32.totalorder %s922_s17, 3 }
   0x5   : > { %s1093_s18 = smov (%p29_p1, %s27_s18), 0  ;;  %p187_p3 = pnand %p701_p0, %p186_p2 }
   0x6   : > { %v274_v0 = vld [vmem:[%s1087_s2] sm:$0xff] (!%p187_p3)  ;;  %v275_v1 = vld [vmem:[%s1087_s2 + $0x8] sm:$0xff] (!%p187_p3)  ;;  %v276_v2 = vld [vmem:[%s1087_s2 + $0x10] sm:$0xff] (!%p187_p3)  ;;  %p223_p4 = scmp.lt.s32.totalorder (!%p187_p3), %s914_s15, 1  ;;  %v248_v3 = vlaneseq (!%p187_p3)  ;;  %vm282_vm0 = vcmask (!%p187_p3), 523264   ;;  %vm468_vm1 = vcmask (!%p187_p3), 1046528  }
   0x7   : > { %190 = sbr.rel (%p187_p3) target bundleno = 303 (0x12f), region = 32  ;;  %v820_v4 = vpack.c.bf16 (!%p187_p3), %v275_v1, %v274_v0  ;;  %v277_v5 = vld [vmem:[%s1087_s2 + $0x18] sm:$0xff] (!%p187_p3)  ;;  %v709_v6 = vld [vmem:[%s1087_s2 + $0x40] sm:$0xff] (!%p187_p3)  ;;  %v710_v7 = vld [vmem:[%s1087_s2 + $0x48] sm:$0xff] (!%p187_p3)  ;;  %vm366_vm2 = vcmask (!%p187_p3), 1040384   ;;  %vm577_vm3 = vcmask (!%p187_p3), 517120  }
   0x8   : > { %v824_v8 = vpack.c.bf16 (!%p187_p3), %v277_v5, %v276_v2  ;;  %v836_v9 = vpack.c.bf16 (!%p187_p3), %v710_v7, %v709_v6  ;;  %v278_v10 = vld [vmem:[%s1087_s2 + $0x20] sm:$0xff] (!%p187_p3)  ;;  %v279_v11 = vld [vmem:[%s1087_s2 + $0x28] sm:$0xff] (!%p187_p3)  ;;  %v711_v12 = vld [vmem:[%s1087_s2 + $0x50] sm:$0xff] (!%p187_p3)  ;;  %v249_v13 = vshrl.u32 (!%p187_p3), %v248_v3, 7 }
   0x9   : > { %821 = vmatprep.subr.bf16.mxu0 (!%p187_p3), %v820_v4  ;;  %v712_v14 = vld [vmem:[%s1087_s2 + $0x58] sm:$0xff] (!%p187_p3)  ;;  %v713_v16 = vld [vmem:[%s1087_s2 + $0x60] sm:$0xff] (!%p187_p3)  ;;  %v714_v17 = vld [vmem:[%s1087_s2 + $0x68] sm:$0xff] (!%p187_p3)  ;;  %v828_v19 = vpack.c.bf16 (!%p187_p3), %v279_v11, %v278_v10 }
   0xa   : > { %823 = vmatpush3.bf16.msra.mxu0 (!%p187_p3), %v820_v4  ;;  %837 = vmatprep.subr.bf16.mxu1 (!%p187_p3), %v836_v9  ;;  %v840_v15 = vpack.c.bf16 (!%p187_p3), %v712_v14, %v711_v12  ;;  %v245_v18 = vld [vmem:[%s1086_s1] sm:$0x3] (!%p187_p3)  ;;  %v280_v20 = vld [vmem:[%s1087_s2 + $0x30] sm:$0xff] (!%p187_p3)  ;;  %v250_v21 = vsub.s32 (!%p187_p3), 0, %v249_v13  ;;  %v256_v22 = vsub.s32 (!%p187_p3), 1, %v249_v13  ;;  %v281_v23 = vld [vmem:[%s1087_s2 + $0x38] sm:$0xff] (!%p187_p3)  ;;  %v844_v24 = vpack.c.bf16 (!%p187_p3), %v714_v17, %v713_v16 }
   0xb   : > { %825 = vmatprep.subr.bf16.mxu0 (!%p187_p3), %v824_v8  ;;  %839 = vmatpush3.bf16.msra.mxu1 (!%p187_p3), %v836_v9  ;;  %v715_v29 = vld [vmem:[%s1087_s2 + $0x70] sm:$0xff] (!%p187_p3)  ;;  %v716_v30 = vld [vmem:[%s1087_s2 + $0x78] sm:$0xff] (!%p187_p3)  ;;  %v832_v31 = vpack.c.bf16 (!%p187_p3), %v281_v23, %v280_v20  ;;  %v719_v35 = vld [vmem:[%s1087_s2 + $0x80] sm:$0xff] (!%p187_p3) }
   0xc   : > { %841 = vmatprep.subr.bf16.mxu1 (!%p187_p3), %v840_v15  ;;  %v251_v27 = vrot.slane (!%p187_p3), %v245_v18, %v250_v21  ;;  %v257_v28 = vrot.slane (!%p187_p3), %v245_v18, %v256_v22  ;;  %v848_v34 = vpack.c.bf16 (!%p187_p3), %v716_v30, %v715_v29  ;;  %v720_v36 = vld [vmem:[%s1087_s2 + $0x88] sm:$0xff] (!%p187_p3)  ;;  %v721_v48 = vld [vmem:[%s1087_s2 + $0x90] sm:$0xff] (!%p187_p3)  ;;  %v722_v49 = vld [vmem:[%s1087_s2 + $0x98] sm:$0xff] (!%p187_p3) }
   0xd   : > { %v852_v40 = vpack.c.bf16 (!%p187_p3), %v720_v36, %v719_v35  ;;  %v856_v54 = vpack.c.bf16 (!%p187_p3), %v722_v49, %v721_v48  ;;  %v723_v55 = vld [vmem:[%s1087_s2 + $0xa0] sm:$0xff] (!%p187_p3)  ;;  %v724_v56 = vld [vmem:[%s1087_s2 + $0xa8] sm:$0xff] (!%p187_p3)  ;;  %v725_v61 = vld [vmem:[%s1087_s2 + $0xb0] sm:$0xff] (!%p187_p3) }
   0xe   : > { %s1095_s15 = smov (!%p223_p4, %s914_s15), 1  ;;  %827 = vmatpush3.bf16.msra.mxu0 %v824_v8  ;;  %v860_v59 = vpack.c.bf16 %v724_v56, %v723_v55  ;;  %v726_v62 = vld [vmem:[%s1087_s2 + $0xb8] sm:$0xff] }
   0xf   : > { %s731_s21 = sshll.u32 %s1095_s15, 4  ;;  %829 = vmatprep.subr.bf16.mxu0 %v828_v19  ;;  %843 = vmatpush3.bf16.msra.mxu1 %v840_v15  ;;  %v864_v63 = vpack.c.bf16 %v726_v62, %v725_v61 }
  0x10   : > { %s230_s28 = scalar_lea.vmem %s1085_s0, %s731_s21  ;;  %845 = vmatprep.subr.bf16.mxu1 %v844_v24  ;;  %s238_s6 = scalar_lea.vmem %s1088_s3, %s731_s21 }
  0x11   : > { %v246_v25 = vld [vmem:[%s230_s28] sm:$0xff]  ;;  %v247_v26 = vld [vmem:[%s230_s28 + $0x8] sm:$0xff]  ;;  %s706_s21 = sshll.u32 %s1095_s15, 1 }
  0x12   : > { %v252_v32 = vmul.f32 %v251_v27, %v246_v25  ;;  %v253_v33 = vmul.f32 %v251_v27, %v247_v26  ;;  %831 = vmatpush3.bf16.msra.mxu0 %v828_v19  ;;  %s243_s9 = scalar_lea.vmem %s1089_s4, %s706_s21 }
  0x13   : > { %833 = vmatprep.subr.bf16.mxu0 %v832_v31  ;;  %847 = vmatpush3.bf16.msra.mxu1 %v844_v24 }
  0x14   : > { %v258_v37 = vadd.f32 %v257_v28, %v252_v32  ;;  %v259_v38 = vadd.f32 %v257_v28, %v253_v33  ;;  %849 = vmatprep.subr.bf16.mxu1 %v848_v34 }
  0x16   : > { %v260_v39 = vsub.f32 0.0, %v258_v37  ;;  %v261_v41 = vsub.f32 0.0, %v259_v38  ;;  %835 = vmatpush3.bf16.msra.mxu0 %v832_v31 }
  0x17   : > { %853 = vmatprep.subr.bf16.mxu0 %v852_v40  ;;  %851 = vmatpush3.bf16.msra.mxu1 %v848_v34 }
  0x18   : > { %v262_v42 = vmul.f32 1.442695, %v260_v39  ;;  %v264_v43 = vmul.f32 1.442695, %v261_v41 }
  0x1a   : > { %892 = vpow2.f32 %v262_v42 }
  0x1b   : > { %894 = vpow2.f32 %v264_v43 }
  0x24   : > { %v893_v44 = vpop.eup %892 }
  0x25   : > { %v895_v45 = vpop.eup %894  ;;  %v266_v46 = vadd.f32 1.0, %v893_v44 }
  0x26   : > { %v267_v47 = vadd.f32 1.0, %v895_v45 }
  0x27   : > { %896 = vrcp.f32 %v266_v46 }
  0x28   : > { %898 = vrcp.f32 %v267_v47 }
  0x31   : > { %v897_v50 = vpop.eup %896 }
  0x32   : > { %v899_v51 = vpop.eup %898  ;;  %v272_v52 = vmul.f32 %v897_v50, %v258_v37 }
  0x33   : > { %v273_v53 = vmul.f32 %v899_v51, %v259_v38 }
  0x34   : > { %779 = vmatprep.mubr.msk.f32.mxu0 %vm282_vm0, %v272_v52  ;;  %798 = vmatprep.mubr.msk.f32.mxu1 %vm282_vm0, %v272_v52  ;;  %v469_v57 = vrot.slane %v272_v52, 1 }
  0x35   : > { %780 = vmatmul.mubr.msk.f32.vlgmr.msra.gmra.mrb[0].mxu0 %vm282_vm0, %v273_v53  ;;  %799 = vmatmul.mubr.msk.f32.vlgmr.msra.gmra.mrb[0].mxu1 %vm282_vm0, %v273_v53  ;;  %v470_v58 = vrot.slane %v273_v53, 1 }
  0x36   : > { %855 = vmatpush3.bf16.msra.mxu0 %v852_v40 }
  0x37   : > { %857 = vmatprep.subr.bf16.mxu0 %v856_v54  ;;  %v471_v60 = vsel %vm468_vm1, %v469_v57, %v470_v58 }
  0x38   : > { %817 = vmatprep.mubr.msk.f32.mxu0 %vm282_vm0, %v471_v60 }
  0x3a   : > { %859 = vmatpush3.bf16.msra.mxu0 %v856_v54 }
  0x3b   : > { %861 = vmatprep.subr.bf16.mxu0 %v860_v59 }
  0x3e   : > { %863 = vmatpush3.bf16.msra.mxu0 %v860_v59 }
  0x3f   : > { %865 = vmatprep.subr.bf16.mxu0 %v864_v63 }
  0x42   : > { %867 = vmatpush3.bf16.msra.mxu0 %v864_v63 }
  0x45   : > { %818 = vmatmul.mubr.msk.f32.vlgmr.msra.gmra.mrb[2].mxu0 %vm282_vm0, %v470_v58 }
 0x108   : > { %v781_v0 = vpop.f32.mrb[0].mxu0  ;;  %v800_v1 = vpop.f32.mrb[0].mxu1 }
 0x109   : > { %v368_v2 = vrot.slane %v781_v0, 7  ;;  %v355_v3 = vpop.f32.mrb[1].mxu0  ;;  %v448_v4 = vpop.f32.mrb[1].mxu1 }
 0x10a   : > { %v367_v5 = vrot.slane %v355_v3, 7 }
 0x10c   : > { %v369_v6 = vsel %vm366_vm2, %v367_v5, %v368_v2  ;;  %v372_v7 = vsel %vm366_vm2, 0.0, %v367_v5 }
 0x10d   : > { %v458_v8 = vadd.f32 %v800_v1, %v369_v6  ;;  %v457_v9 = vadd.f32 %v448_v4, %v372_v7 }
 0x118   : > { %v819_v10 = vpop.f32.mrb[2].mxu0 }
 0x119   : > { %v551_v11 = vsel %vm468_vm1, %v819_v10, 0.0  ;;  %v542_v12 = vpop.f32.mrb[3].mxu0 }
 0x11a   : > { %v553_v13 = vadd.f32 %v551_v11, %v458_v8  ;;  %v552_v14 = vadd.f32 %v542_v12, %v457_v9 }
 0x11c   : > { %555 = vst.msk [vmem:[%s238_s6 + $0x8] sm:$0xff] %vm282_vm0, %v553_v13  ;;  %v557_v15 = vsel %vm282_vm0, %v553_v13, 0.0  ;;  %v566_v16 = vmul.f32 %v553_v13, %v553_v13  ;;  %554 = vst.msk [vmem:[%s238_s6] sm:$0xff] %vm282_vm0, %v552_v14  ;;  %v556_v17 = vsel %vm282_vm0, %v552_v14, 0.0  ;;  %v565_v18 = vmul.f32 %v552_v14, %v552_v14 }
 0x11d   : > { %v558_v19 = vadd.f32 %v557_v15, %v556_v17 }
 0x11e   : > { %v568_v20 = vsel %vm282_vm0, %v566_v16, 0.0  ;;  %v567_v21 = vsel %vm282_vm0, %v565_v18, 0.0 }
 0x11f   : > { %v559_v22 = vrot.slane %v558_v19, 4  ;;  %v569_v23 = vadd.f32 %v568_v20, %v567_v21 }
 0x121   : > { %v560_v24 = vadd.f32 %v559_v22, %v558_v19  ;;  %v570_v25 = vrot.slane %v569_v23, 4 }
 0x123   : > { %v561_v26 = vrot.slane %v560_v24, 2  ;;  %v571_v27 = vadd.f32 %v570_v25, %v569_v23 }
 0x125   : > { %v562_v28 = vadd.f32 %v561_v26, %v560_v24  ;;  %v572_v29 = vrot.slane %v571_v27, 2 }
 0x127   : > { %v563_v30 = vrot.slane %v562_v28, 1  ;;  %v573_v31 = vadd.f32 %v572_v29, %v571_v27 }
 0x129   : > { %v574_v32 = vrot.slane %v573_v31, 1  ;;  %v564_v33 = vadd.f32 %v563_v30, %v562_v28 }
 0x12b   : > { %v575_v34 = vadd.f32 %v574_v32, %v573_v31 }
 0x12d   : > { %v576_v35 = vsel %vm366_vm2, %v564_v33, %v575_v34 }
 0x12e   : > { %578 = vst.msk [vmem:[%s243_s9] sm:$0x3] %vm577_vm3, %v576_v35 }
 0x12f PF: > { %s15_s17 = sadd.s32 1, %s922_s17   ;;  %s1090_s15 = smov %s918_s16 }
 0x130   : > { %p12_p5 = scmp.ge.s32.totalorder %s15_s17, 4   ;;  %s1091_s16 = smov %s1093_s18 }
 0x132   :  { %14 = sbr.rel (!%p12_p5) target bundleno = 2 (0x2), region = 76 }

</bundles_post_ra>
